<compile_context>
chip_gen: v6e
topology: v6e:2x2x1
jax: 0.10.0
libtpu: 0.0.40
codegen_flags: <defaults>
</compile_context>

<pallas_src>
import functools

import jax
import jax.numpy as jnp
from jax.experimental import pallas as pl
from jax.experimental.pallas import tpu as pltpu


def _leaky_relu(x, negative_slope=0.2):
    return jnp.where(x > 0, x, negative_slope * x)


def _disc_linear_kernel(x_ref, w1_ref, b1_ref, w2_ref, b2_ref, w3_ref, b3_ref,
                        out_ref):
    # x_ref: (TB, K) bf16; w1_ref: (K, 512) bf16; w2_ref: (512, 256) bf16
    # b1_ref: (1, 512) f32; b2_ref: (1, 256) f32
    # w3_ref: (1, 256) f32 (row vector); b3_ref: (1,) f32 in SMEM
    h1 = jnp.dot(x_ref[...], w1_ref[...], preferred_element_type=jnp.float32)
    h1 = _leaky_relu(h1 + b1_ref[...])

    h2 = jnp.dot(h1.astype(jnp.bfloat16), w2_ref[...],
                 preferred_element_type=jnp.float32)
    h2 = _leaky_relu(h2 + b2_ref[...])

    # Final Linear(256, 1) as a VPU reduction (avoids a wasteful N=1 MXU tile).
    h3 = jnp.sum(h2 * w3_ref[...], axis=-1, keepdims=True) + b3_ref[0]
    out_ref[...] = h3.astype(out_ref.dtype)


def _round_up(x, m):
    return (x + m - 1) // m * m


def discriminator_linear(x, params, *, tb_max=512):
    """x: (B, C, N). Returns validity of shape (B, 1), float32."""
    w1, b1, w2, b2, w3, b3 = params
    B = x.shape[0]
    K = w1.shape[0]                      # in_features = C * N
    H1 = w1.shape[1]                     # 512
    H2 = w2.shape[1]                     # 256

    x_flat = x.reshape(B, -1)            # (B, C*N) — same as X.view(B, -1)

    # Batch tile: multiple of 8 (f32/bf16 sublanes), capped for VMEM.
    TB = min(tb_max, _round_up(B, 8))
    B_pad = _round_up(B, TB)
    if B_pad != B:
        x_flat = jnp.pad(x_flat, ((0, B_pad - B), (0, 0)))

    # bf16 operands for the MXU matmuls; accumulation stays f32 in-kernel.
    x_bf16 = x_flat.astype(jnp.bfloat16)
    w1_bf16 = w1.astype(jnp.bfloat16)
    w2_bf16 = w2.astype(jnp.bfloat16)
    b1_f32 = b1.astype(jnp.float32).reshape(1, H1)
    b2_f32 = b2.astype(jnp.float32).reshape(1, H2)
    w3_row = w3.astype(jnp.float32).reshape(1, H2)   # (1, 256) row for VPU reduce
    b3_s = b3.astype(jnp.float32).reshape(1,)        # scalar in SMEM

    grid = (B_pad // TB,)

    in_specs = [
        pl.BlockSpec((TB, K), lambda i: (i, 0)),        # x tile (pipelined)
        pl.BlockSpec((K, H1), lambda i: (0, 0)),        # w1 resident
        pl.BlockSpec((1, H1), lambda i: (0, 0)),        # b1 resident
        pl.BlockSpec((H1, H2), lambda i: (0, 0)),       # w2 resident
        pl.BlockSpec((1, H2), lambda i: (0, 0)),        # b2 resident
        pl.BlockSpec((1, H2), lambda i: (0, 0)),        # w3 row resident
        pl.BlockSpec(memory_space=pltpu.MemorySpace.SMEM),  # b3 scalar
    ]
    out_specs = pl.BlockSpec((TB, 1), lambda i: (i, 0))

    # Explicit VMEM budget: resident weights + double-buffered x/out tiles
    # + f32 intermediates, with headroom. Capped at 64 MiB (v7x physical).
    est = (
        K * H1 * 2 + H1 * H2 * 2            # bf16 weights
        + (H1 + 2 * H2) * 4                 # biases + w3 row (f32)
        + 2 * TB * K * 2                    # double-buffered x tiles (bf16)
        + 2 * TB * 1 * 4                    # double-buffered out tiles (f32)
        + TB * (H1 + H2) * 4                # f32 intermediates h1, h2
    )
    vmem_bytes = int(1.5 * est)
    vmem_bytes = max(vmem_bytes, 32 * 1024 * 1024)
    vmem_bytes = min(vmem_bytes, 64 * 1024 * 1024)

    out_pad = pl.pallas_call(
        _disc_linear_kernel,
        out_shape=jax.ShapeDtypeStruct((B_pad, 1), jnp.float32),
        grid=grid,
        in_specs=in_specs,
        out_specs=out_specs,
        compiler_params=pltpu.CompilerParams(
            dimension_semantics=("parallel",),
            vmem_limit_bytes=vmem_bytes,
        ),
    )(x_bf16, w1_bf16, b1_f32, w2_bf16, b2_f32, w3_row, b3_s)

    return out_pad[:B]


def init_params(key, in_features, dtype=jnp.float32):
    """Deterministic synthetic init (shapes follow the PyTorch module)."""
    dims = [(in_features, 512), (512, 256), (256, 1)]
    params = []
    for i, (fin, fout) in enumerate(dims):
        kw, kb = jax.random.split(jax.random.fold_in(key, i))
        bound = 1.0 / (fin ** 0.5)
        w = jax.random.uniform(kw, (fin, fout), dtype, -bound, bound)
        b = jax.random.uniform(kb, (1, fout), dtype, -bound, bound)
        params.extend([w, b])
    return tuple(params)


def reference_forward(x, params):
    """Pure-JAX f32 reference for a correctness check."""
    w1, b1, w2, b2, w3, b3 = params
    h = x.reshape(x.shape[0], -1)
    h = _leaky_relu(h @ w1 + b1)
    h = _leaky_relu(h @ w2 + b2)
    return h @ w3 + b3


if __name__ == "__main__":
    key = jax.random.PRNGKey(0)
    B, C, N = 2, 4, 8  # X_shape = (B, C, N) -> in_features = C * N = 32

    kx, kp = jax.random.split(key)
    x = jax.random.normal(kx, (B, C, N), dtype=jnp.float32)
    params = init_params(kp, C * N)

    out = discriminator_linear(x, params)
    out = jax.block_until_ready(out)

    ref = reference_forward(x, params)
    assert out.shape == (B, 1)
    # bf16 matmul operands (f32 accumulation) -> loosened tolerance vs f32 ref.
    assert jnp.allclose(out, ref, atol=5e-2, rtol=5e-2), "mismatch vs reference"

    print("KERNEL_OK")
</pallas_src>

<mosaic_0001>
module attributes {stable_mosaic.version = 11 : i64} {
  func.func @_disc_linear_kernel(%arg0: i32, %arg1: memref<8x32xbf16, #tpu.memory_space<vmem>>, %arg2: memref<32x512xbf16, #tpu.memory_space<vmem>>, %arg3: memref<1x512xf32, #tpu.memory_space<vmem>>, %arg4: memref<512x256xbf16, #tpu.memory_space<vmem>>, %arg5: memref<1x256xf32, #tpu.memory_space<vmem>>, %arg6: memref<1x256xf32, #tpu.memory_space<vmem>>, %arg7: memref<1xf32, #tpu.memory_space<smem>>, %arg8: memref<8x1xf32, #tpu.memory_space<vmem>>) attributes {dimension_semantics = [#tpu.dimension_semantics<parallel>], iteration_bounds = array<i64: 1>, scalar_prefetch = 0 : i64, scratch_operands = 0 : i64, tpu.core_type = #tpu.core_type<tc>, window_params = [{transform_indices = @transform_0, window_bounds = array<i64: 8, 32>}, {pipeline_mode = #tpu.pipeline_mode<synchronous>, transform_indices = @transform_1, window_bounds = array<i64: 32, 512>}, {pipeline_mode = #tpu.pipeline_mode<synchronous>, transform_indices = @transform_2, window_bounds = array<i64: 1, 512>}, {pipeline_mode = #tpu.pipeline_mode<synchronous>, transform_indices = @transform_3, window_bounds = array<i64: 512, 256>}, {pipeline_mode = #tpu.pipeline_mode<synchronous>, transform_indices = @transform_4, window_bounds = array<i64: 1, 256>}, {pipeline_mode = #tpu.pipeline_mode<synchronous>, transform_indices = @transform_5, window_bounds = array<i64: 1, 256>}, {transform_indices = @transform_6, window_bounds = array<i64: 1>}, {transform_indices = @transform_7, window_bounds = array<i64: 8, 1>}]} {
    %c0 = arith.constant 0 : index
    %c0_0 = arith.constant 0 : index
    %0 = vector.load %arg1[%c0, %c0_0] : memref<8x32xbf16, #tpu.memory_space<vmem>>, vector<8x32xbf16>
    %c0_1 = arith.constant 0 : index
    %c0_2 = arith.constant 0 : index
    %1 = vector.load %arg2[%c0_1, %c0_2] : memref<32x512xbf16, #tpu.memory_space<vmem>>, vector<32x512xbf16>
    %cst = arith.constant dense<0.000000e+00> : vector<8x512xf32>
    %2 = tpu.matmul %0, %1, %cst {dimension_numbers = #tpu.dot_dimension_numbers<[1], [0], [0], [1], [0, 0, 1, 1], [], []>} : vector<8x32xbf16>, vector<32x512xbf16>, vector<8x512xf32> -> vector<8x512xf32>
    %c0_3 = arith.constant 0 : index
    %c0_4 = arith.constant 0 : index
    %3 = vector.load %arg3[%c0_3, %c0_4] : memref<1x512xf32, #tpu.memory_space<vmem>>, vector<1x512xf32>
    %4 = vector.broadcast %3 : vector<1x512xf32> to vector<8x512xf32>
    %5 = arith.addf %2, %4 : vector<8x512xf32>
    %cst_5 = arith.constant 0.000000e+00 : f32
    %6 = vector.broadcast %cst_5 : f32 to vector<8x512xf32>
    %7 = arith.cmpf ogt, %5, %6 : vector<8x512xf32>
    %cst_6 = arith.constant 2.000000e-01 : f32
    %8 = vector.broadcast %cst_6 : f32 to vector<8x512xf32>
    %9 = arith.mulf %8, %5 : vector<8x512xf32>
    %10 = arith.select %7, %5, %9 : vector<8x512xi1>, vector<8x512xf32>
    %11 = arith.truncf %10 : vector<8x512xf32> to vector<8x512xbf16>
    %c0_7 = arith.constant 0 : index
    %c0_8 = arith.constant 0 : index
    %12 = vector.load %arg4[%c0_7, %c0_8] : memref<512x256xbf16, #tpu.memory_space<vmem>>, vector<512x256xbf16>
    %cst_9 = arith.constant dense<0.000000e+00> : vector<8x256xf32>
    %13 = tpu.matmul %11, %12, %cst_9 {dimension_numbers = #tpu.dot_dimension_numbers<[1], [0], [0], [1], [0, 0, 1, 1], [], []>} : vector<8x512xbf16>, vector<512x256xbf16>, vector<8x256xf32> -> vector<8x256xf32>
    %c0_10 = arith.constant 0 : index
    %c0_11 = arith.constant 0 : index
    %14 = vector.load %arg5[%c0_10, %c0_11] : memref<1x256xf32, #tpu.memory_space<vmem>>, vector<1x256xf32>
    %15 = vector.broadcast %14 : vector<1x256xf32> to vector<8x256xf32>
    %16 = arith.addf %13, %15 : vector<8x256xf32>
    %cst_12 = arith.constant 0.000000e+00 : f32
    %17 = vector.broadcast %cst_12 : f32 to vector<8x256xf32>
    %18 = arith.cmpf ogt, %16, %17 : vector<8x256xf32>
    %cst_13 = arith.constant 2.000000e-01 : f32
    %19 = vector.broadcast %cst_13 : f32 to vector<8x256xf32>
    %20 = arith.mulf %19, %16 : vector<8x256xf32>
    %21 = arith.select %18, %16, %20 : vector<8x256xi1>, vector<8x256xf32>
    %c0_14 = arith.constant 0 : index
    %c0_15 = arith.constant 0 : index
    %22 = vector.load %arg6[%c0_14, %c0_15] : memref<1x256xf32, #tpu.memory_space<vmem>>, vector<1x256xf32>
    %23 = vector.broadcast %22 : vector<1x256xf32> to vector<8x256xf32>
    %24 = arith.mulf %21, %23 : vector<8x256xf32>
    %cst_16 = arith.constant dense<0.000000e+00> : vector<8xf32>
    %25 = vector.multi_reduction <add>, %24, %cst_16 [1] : vector<8x256xf32> to vector<8xf32>
    %26 = vector.shape_cast %25 : vector<8xf32> to vector<8x1xf32>
    %c0_17 = arith.constant 0 : index
    %27 = memref.load %arg7[%c0_17] : memref<1xf32, #tpu.memory_space<smem>>
    %28 = vector.broadcast %27 : f32 to vector<8x1xf32>
    %29 = arith.addf %26, %28 : vector<8x1xf32>
    %c0_18 = arith.constant 0 : index
    %c0_19 = arith.constant 0 : index
    %30 = vector.load %arg8[%c0_18, %c0_19] : memref<8x1xf32, #tpu.memory_space<vmem>>, vector<8x1xf32>
    tpu.vector_store %arg8[%c0_18, %c0_19], %29 {strides = array<i32>} : memref<8x1xf32, #tpu.memory_space<vmem>>, vector<8x1xf32>,
    return
  }
  func.func @transform_0(%arg0: i32) -> (i32, i32) {
    %c0_i32 = arith.constant 0 : i32
    %c0_i32_0 = arith.constant 0 : i32
    return %arg0, %c0_i32 : i32, i32
  }
  func.func @transform_1(%arg0: i32) -> (i32, i32) {
    %c0_i32 = arith.constant 0 : i32
    %c0_i32_0 = arith.constant 0 : i32
    %c0_i32_1 = arith.constant 0 : i32
    return %c0_i32, %c0_i32_0 : i32, i32
  }
  func.func @transform_2(%arg0: i32) -> (i32, i32) {
    %c0_i32 = arith.constant 0 : i32
    %c0_i32_0 = arith.constant 0 : i32
    %c0_i32_1 = arith.constant 0 : i32
    return %c0_i32, %c0_i32_0 : i32, i32
  }
  func.func @transform_3(%arg0: i32) -> (i32, i32) {
    %c0_i32 = arith.constant 0 : i32
    %c0_i32_0 = arith.constant 0 : i32
    %c0_i32_1 = arith.constant 0 : i32
    return %c0_i32, %c0_i32_0 : i32, i32
  }
  func.func @transform_4(%arg0: i32) -> (i32, i32) {
    %c0_i32 = arith.constant 0 : i32
    %c0_i32_0 = arith.constant 0 : i32
    %c0_i32_1 = arith.constant 0 : i32
    return %c0_i32, %c0_i32_0 : i32, i32
  }
  func.func @transform_5(%arg0: i32) -> (i32, i32) {
    %c0_i32 = arith.constant 0 : i32
    %c0_i32_0 = arith.constant 0 : i32
    %c0_i32_1 = arith.constant 0 : i32
    return %c0_i32, %c0_i32_0 : i32, i32
  }
  func.func @transform_6(%arg0: i32) -> i32 {
    %c0_i32 = arith.constant 0 : i32
    %c0_i32_0 = arith.constant 0 : i32
    return %c0_i32 : i32
  }
  func.func @transform_7(%arg0: i32) -> (i32, i32) {
    %c0_i32 = arith.constant 0 : i32
    %c0_i32_0 = arith.constant 0 : i32
    return %arg0, %c0_i32 : i32, i32
  }
}

</mosaic_0001>

<bundles_post_ra>
// kernel: tpu_custom_call.1
= control target key start
LH: loop header
LB: loop body
LE: loop exit
PB: predicated region body
PF: predicated region fallthrough
CT: control target
= control target key end

     0   :  { %13 = vsyncpa [#allocation4], 0  ;;  %s1088_s0 = inlined_call_operand.hbm [shape: bf16[8,32], index: 0, kind: input, shape index: {}]   ;;  %s1089_s1 = inlined_call_operand.hbm [shape: bf16[32,512], index: 1, kind: input, shape index: {}]   ;;  %s1090_s2 = inlined_call_operand.vmem [shape: f32[1,512], index: 2, kind: input, shape index: {}]   ;;  %s1091_s3 = inlined_call_operand.hbm [shape: bf16[512,256], index: 3, kind: input, shape index: {}]   ;;  %s1092_s4 = inlined_call_operand.vmem [shape: f32[1,256], index: 4, kind: input, shape index: {}]   ;;  %s1093_s5 = inlined_call_operand.vmem [shape: f32[1,256], index: 5, kind: input, shape index: {}]   ;;  %s1094_s6 = inlined_call_operand.<no memory space> [shape: f32[1], index: 6, kind: input, shape index: {}]   ;;  %s1095_s7 = inlined_call_operand.vmem [shape: f32[8,1], index: 7, kind: output, shape index: {}]  }
   0x1   :  { %14 = vsyncpa [#allocation6], 0  ;;  %s1006_s24 = smov [#allocation5]  }
   0x2   :  { %s30_s25 = sshll.u32 %s1006_s24, 4  ;;  %s31_s25 = int_to_ptr.vmem [resolvable:$true] %s30_s25 }
   0x3   :  { %s950_s26 = scalar_lea.vmem %s31_s25, 1024  ;;  %p955_p1 = scmp.lt.s32.totalorder %s31_s25, %s31_s25 }
   0x4   :  { %p951_p0 = scmp.ne.s32.totalorder %s31_s25, %s950_s26  ;;  %p956_p2 = scmp.lt.s32.totalorder %s950_s26, %s950_s26 }
   0x6   :  { %p957_p3 = por %p956_p2, %p955_p1 }
   0x8   :  { %p958_p4 = pnand %p957_p3, %p951_p0 }
   0xa   :  { %961 = shalt.err (!%p958_p4)
}
   0xb   :  { %s1007_s27 = smov 256   ;;  %s1008_s28 = smov 16  }
   0xc   :  { %36 = dma.hbm_to_vmem [thread:$0]  %s1089_s1, 1024, %s31_s25, [#allocation6], %s1007_s27, %s1007_s27, %s1008_s28  }
   0xd   :  { %s1009_s8 = smov [#allocation3]   ;;  %s1010_s10 = smov [#allocation7]  }
   0xe   :  { %s21_s9 = sshll.u32 %s1009_s8, 4  ;;  %s44_s11 = sshll.u32 %s1010_s10, 4  ;;  %s22_s9 = int_to_ptr.vmem [resolvable:$true] %s21_s9  ;;  %s45_s11 = int_to_ptr.vmem [resolvable:$true] %s44_s11 }
   0xf   :  { %s970_s12 = scalar_lea.vmem %s22_s9, 64  ;;  %p975_p6 = scmp.lt.s32.totalorder %s22_s9, %s22_s9 }
  0x10   :  { %p971_p5 = scmp.ne.s32.totalorder %s22_s9, %s970_s12  ;;  %p976_p7 = scmp.lt.s32.totalorder %s970_s12, %s970_s12 }
  0x12   :  { %p977_p8 = por %p976_p7, %p975_p6 }
  0x14   :  { %p978_p9 = pnand %p977_p8, %p971_p5 }
  0x16   :  { %981 = shalt.err (!%p978_p9)
}
  0x17   :  { %24 = dma.hbm_to_vmem [thread:$0]  %s1088_s0, 64, %s22_s9, [#allocation4]  }
  0x18   :  { %s990_s15 = scalar_lea.vmem %s45_s11, 8192  ;;  %p995_p11 = scmp.lt.s32.totalorder %s45_s11, %s45_s11 }
  0x19   :  { %p991_p10 = scmp.ne.s32.totalorder %s45_s11, %s990_s15  ;;  %p996_p12 = scmp.lt.s32.totalorder %s990_s15, %s990_s15 }
  0x1b   :  { %p997_p13 = por %p996_p12, %p995_p11 }
  0x1d   :  { %p998_p0 = pnand %p997_p13, %p991_p10 }
  0x1f   :  { %1001 = shalt.err (!%p998_p0)
}
  0x20   :  { %s1011_s1 = smov 128   ;;  %s1012_s16 = smov 8  }
  0x21   :  { %50 = dma.hbm_to_vmem [thread:$0]  %s1091_s3, 8192, %s45_s11, [#allocation6], %s1011_s1, %s1011_s1, %s1012_s16  }
  0x22   :  { %1002 = dma.done.wait [#allocation4], 64  }
  0x23   :  { %1003 = vsyncadd [#allocation4], 4294967232 }
  0x24   :  { %1004 = dma.done.wait [#allocation6], 9216  }
  0x25   :  { %1005 = vsyncadd [#allocation6], 4294958080  ;;  %v1013_v0 = vmov 0   ;;  %v834_v1 = vld [vmem:[#allocation5 + $0x24] ss:$16 sps:$4 sm:$0xff]   ;;  %vm138_vm0 = vcmask 261120  }
  0x26   :  { %174 = vmatprep.mubr.bf16.mxu0 %v1013_v0  ;;  %215 = vmatprep.mubr.bf16.mxu1 %v1013_v0  ;;  %v836_v2 = vld [vmem:[#allocation5 + $0x2c] ss:$16 sps:$4 sm:$0xff]   ;;  %v838_v3 = vld [vmem:[#allocation5 + $0x20] ss:$16 sps:$4 sm:$0xff]   ;;  %v839_v4 = vld [vmem:[#allocation5 + $0x28] ss:$16 sps:$4 sm:$0xff]  }
  0x27   :  { %154 = vmatprep.subr.bf16.mxu0 %v834_v1  ;;  %195 = vmatprep.subr.bf16.mxu1 %v836_v2  ;;  %v840_v5 = vld [vmem:[#allocation5 + $0x4] ss:$16 sps:$4 sm:$0xff]   ;;  %v842_v6 = vld [vmem:[#allocation5 + $0xc] ss:$16 sps:$4 sm:$0xff]   ;;  %v844_v7 = vld [vmem:[#allocation5] ss:$16 sps:$4 sm:$0xff]  }
  0x28   :  { %155 = vmatpush1.bf16.msra.mxu0 %v838_v3  ;;  %196 = vmatpush1.bf16.msra.mxu1 %v839_v4  ;;  %v845_v8 = vld [vmem:[#allocation5 + $0x8] ss:$16 sps:$4 sm:$0xff]   ;;  %v67_v9 = vld [vmem:[#allocation3] sm:$0xf]  ;;  %v854_v14 = vld [vmem:[#allocation7 + $0x64] ss:$8 sps:$4 sm:$0xff]  }
  0x29   :  { %156 = vmatprep.subr.bf16.mxu0 %v840_v5  ;;  %197 = vmatprep.subr.bf16.mxu1 %v842_v6  ;;  %v846_v10 = vld [vmem:[#allocation7 + $0x70] ss:$8 sps:$4 sm:$0xff]   ;;  %v848_v11 = vld [vmem:[#allocation7 + $0x74] ss:$8 sps:$4 sm:$0xff]   ;;  %v857_v15 = vld [vmem:[#allocation7 + $0x164] ss:$8 sps:$4 sm:$0xff]  }
  0x2a   :  { %v849_v12 = vld [vmem:[#allocation7 + $0x170] ss:$8 sps:$4 sm:$0xff]   ;;  %v851_v13 = vld [vmem:[#allocation7 + $0x174] ss:$8 sps:$4 sm:$0xff]   ;;  %v852_v16 = vld [vmem:[#allocation7 + $0x60] ss:$8 sps:$4 sm:$0xff]  }
  0x2b   :  { %v855_v17 = vld [vmem:[#allocation7 + $0x160] ss:$8 sps:$4 sm:$0xff]   ;;  %v860_v18 = vld [vmem:[#allocation7 + $0x54] ss:$8 sps:$4 sm:$0xff]   ;;  %v858_v20 = vld [vmem:[#allocation7 + $0x50] ss:$8 sps:$4 sm:$0xff]  }
  0x2c   :  { %157 = vmatpush1.bf16.msra.mxu0 %v844_v7  ;;  %198 = vmatpush1.bf16.msra.mxu1 %v845_v8  ;;  %v863_v19 = vld [vmem:[#allocation7 + $0x154] ss:$8 sps:$4 sm:$0xff]   ;;  %v861_v21 = vld [vmem:[#allocation7 + $0x150] ss:$8 sps:$4 sm:$0xff]   ;;  %v866_v22 = vld [vmem:[#allocation7 + $0x44] ss:$8 sps:$4 sm:$0xff]  }
  0x2d   :  { %636 = vmatprep.subr.bf16.mxu0 %v848_v11  ;;  %677 = vmatprep.subr.bf16.mxu1 %v851_v13  ;;  %v869_v23 = vld [vmem:[#allocation7 + $0x144] ss:$8 sps:$4 sm:$0xff]   ;;  %v864_v24 = vld [vmem:[#allocation7 + $0x40] ss:$8 sps:$4 sm:$0xff]   ;;  %v872_v26 = vld [vmem:[#allocation7 + $0x34] ss:$8 sps:$4 sm:$0xff]  }
  0x2e   :  { %v867_v25 = vld [vmem:[#allocation7 + $0x140] ss:$8 sps:$4 sm:$0xff]   ;;  %v875_v27 = vld [vmem:[#allocation7 + $0x134] ss:$8 sps:$4 sm:$0xff]   ;;  %v870_v28 = vld [vmem:[#allocation7 + $0x30] ss:$8 sps:$4 sm:$0xff]  }
  0x2f   :  { %760 = vmatmul.mubr.msk.bf16.vlgmr.msra.gmra.mxu0 %vm138_vm0, %v67_v9  ;;  %761 = vmatmul.mubr.msk.bf16.vlgmr.msra.gmra.mxu1 %vm138_vm0, %v67_v9  ;;  %v873_v29 = vld [vmem:[#allocation7 + $0x130] ss:$8 sps:$4 sm:$0xff]   ;;  %v878_v30 = vld [vmem:[#allocation7 + $0x24] ss:$8 sps:$4 sm:$0xff]   ;;  %v876_v32 = vld [vmem:[#allocation7 + $0x20] ss:$8 sps:$4 sm:$0xff]  }
  0x30   :  { %637 = vmatpush1.bf16.msra.mxu0 %v846_v10  ;;  %678 = vmatpush1.bf16.msra.mxu1 %v849_v12  ;;  %v881_v31 = vld [vmem:[#allocation7 + $0x124] ss:$8 sps:$4 sm:$0xff]   ;;  %v879_v33 = vld [vmem:[#allocation7 + $0x120] ss:$8 sps:$4 sm:$0xff]   ;;  %v884_v34 = vld [vmem:[#allocation7 + $0x14] ss:$8 sps:$4 sm:$0xff]   ;;  %v78_v10 = vlaneseq }
  0x31   :  { %638 = vmatprep.subr.bf16.mxu0 %v854_v14  ;;  %679 = vmatprep.subr.bf16.mxu1 %v857_v15  ;;  %v887_v35 = vld [vmem:[#allocation7 + $0x114] ss:$8 sps:$4 sm:$0xff]   ;;  %v882_v36 = vld [vmem:[#allocation7 + $0x10] ss:$8 sps:$4 sm:$0xff]   ;;  %v890_v38 = vld [vmem:[#allocation7 + $0x4] ss:$8 sps:$4 sm:$0xff]  }
  0x32   :  { %v885_v37 = vld [vmem:[#allocation7 + $0x110] ss:$8 sps:$4 sm:$0xff]   ;;  %v893_v39 = vld [vmem:[#allocation7 + $0x104] ss:$8 sps:$4 sm:$0xff]   ;;  %v888_v40 = vld [vmem:[#allocation7] ss:$8 sps:$4 sm:$0xff]  }
  0x33   :  { %v891_v41 = vld [vmem:[#allocation7 + $0x100] ss:$8 sps:$4 sm:$0xff]   ;;  %v896_v42 = vld [vmem:[#allocation7 + $0xf4] ss:$8 sps:$4 sm:$0xff]   ;;  %v894_v44 = vld [vmem:[#allocation7 + $0xf0] ss:$8 sps:$4 sm:$0xff]  }
  0x34   :  { %639 = vmatpush1.bf16.msra.mxu0 %v852_v16  ;;  %680 = vmatpush1.bf16.msra.mxu1 %v855_v17  ;;  %v899_v43 = vld [vmem:[#allocation7 + $0x1f4] ss:$8 sps:$4 sm:$0xff]   ;;  %v897_v45 = vld [vmem:[#allocation7 + $0x1f0] ss:$8 sps:$4 sm:$0xff]   ;;  %v902_v46 = vld [vmem:[#allocation7 + $0xe4] ss:$8 sps:$4 sm:$0xff]  }
  0x35   :  { %640 = vmatprep.subr.bf16.mxu0 %v860_v18  ;;  %681 = vmatprep.subr.bf16.mxu1 %v863_v19  ;;  %v905_v47 = vld [vmem:[#allocation7 + $0x1e4] ss:$8 sps:$4 sm:$0xff]   ;;  %v900_v48 = vld [vmem:[#allocation7 + $0xe0] ss:$8 sps:$4 sm:$0xff]   ;;  %v908_v50 = vld [vmem:[#allocation7 + $0xd4] ss:$8 sps:$4 sm:$0xff]  }
  0x36   :  { %v903_v49 = vld [vmem:[#allocation7 + $0x1e0] ss:$8 sps:$4 sm:$0xff]   ;;  %v911_v51 = vld [vmem:[#allocation7 + $0x1d4] ss:$8 sps:$4 sm:$0xff]   ;;  %v906_v52 = vld [vmem:[#allocation7 + $0xd0] ss:$8 sps:$4 sm:$0xff]  }
  0x37   :  { %v909_v53 = vld [vmem:[#allocation7 + $0x1d0] ss:$8 sps:$4 sm:$0xff]   ;;  %v914_v54 = vld [vmem:[#allocation7 + $0xc4] ss:$8 sps:$4 sm:$0xff]   ;;  %v912_v56 = vld [vmem:[#allocation7 + $0xc0] ss:$8 sps:$4 sm:$0xff]  }
  0x38   :  { %641 = vmatpush1.bf16.msra.mxu0 %v858_v20  ;;  %682 = vmatpush1.bf16.msra.mxu1 %v861_v21  ;;  %v917_v55 = vld [vmem:[#allocation7 + $0x1c4] ss:$8 sps:$4 sm:$0xff]   ;;  %v915_v57 = vld [vmem:[#allocation7 + $0x1c0] ss:$8 sps:$4 sm:$0xff]   ;;  %v920_v58 = vld [vmem:[#allocation7 + $0xb4] ss:$8 sps:$4 sm:$0xff]  }
  0x39   :  { %642 = vmatprep.subr.bf16.mxu0 %v866_v22  ;;  %683 = vmatprep.subr.bf16.mxu1 %v869_v23  ;;  %v923_v59 = vld [vmem:[#allocation7 + $0x1b4] ss:$8 sps:$4 sm:$0xff]   ;;  %v918_v60 = vld [vmem:[#allocation7 + $0xb0] ss:$8 sps:$4 sm:$0xff]   ;;  %v926_v62 = vld [vmem:[#allocation7 + $0xa4] ss:$8 sps:$4 sm:$0xff]  }
  0x3a   :  { %v921_v61 = vld [vmem:[#allocation7 + $0x1b0] ss:$8 sps:$4 sm:$0xff]   ;;  %v929_v63 = vld [vmem:[#allocation7 + $0x1a4] ss:$8 sps:$4 sm:$0xff]   ;;  %v924_v0 = vld [vmem:[#allocation7 + $0xa0] ss:$8 sps:$4 sm:$0xff]  }
  0x3b   :  { %v927_v1 = vld [vmem:[#allocation7 + $0x1a0] ss:$8 sps:$4 sm:$0xff]   ;;  %v932_v2 = vld [vmem:[#allocation7 + $0x94] ss:$8 sps:$4 sm:$0xff]   ;;  %v930_v4 = vld [vmem:[#allocation7 + $0x90] ss:$8 sps:$4 sm:$0xff]  }
  0x3c   :  { %643 = vmatpush1.bf16.msra.mxu0 %v864_v24  ;;  %684 = vmatpush1.bf16.msra.mxu1 %v867_v25  ;;  %v935_v3 = vld [vmem:[#allocation7 + $0x194] ss:$8 sps:$4 sm:$0xff]   ;;  %v933_v5 = vld [vmem:[#allocation7 + $0x190] ss:$8 sps:$4 sm:$0xff]   ;;  %v936_v6 = vld [vmem:[#allocation7 + $0x80] ss:$8 sps:$4 sm:$0xff]  }
  0x3d   :  { %644 = vmatprep.subr.bf16.mxu0 %v872_v26  ;;  %685 = vmatprep.subr.bf16.mxu1 %v875_v27  ;;  %v938_v7 = vld [vmem:[#allocation7 + $0x84] ss:$8 sps:$4 sm:$0xff]   ;;  %v939_v8 = vld [vmem:[#allocation7 + $0x180] ss:$8 sps:$4 sm:$0xff]   ;;  %v79_v11 = vshrl.u32 %v78_v10, 7  ;;  %vm744_vm7 = vcmask 7168  }
  0x3e   :  { %v941_v9 = vld [vmem:[#allocation7 + $0x184] ss:$8 sps:$4 sm:$0xff]   ;;  %v76_v14 = vld [vmem:[%s1090_s2] sm:$0xf] }
  0x3f   :  { %v1063_v12 = vsub.s32 0, %v79_v11  ;;  %v88_v13 = vsub.s32 2, %v79_v11  ;;  %v1068_v15 = vsub.s32 1, %v79_v11  ;;  %v92_v16 = vsub.s32 3, %v79_v11 }
  0x40   :  { %645 = vmatpush1.bf16.msra.mxu0 %v870_v28  ;;  %686 = vmatpush1.bf16.msra.mxu1 %v873_v29 }
  0x41   :  { %646 = vmatprep.subr.bf16.mxu0 %v878_v30  ;;  %687 = vmatprep.subr.bf16.mxu1 %v881_v31  ;;  %v81_v17 = vrot.slane %v76_v14, %v1063_v12  ;;  %v89_v18 = vrot.slane %v76_v14, %v88_v13  ;;  %v85_v21 = vrot.slane %v76_v14, %v1068_v15 }
  0x42   :  { %v93_v22 = vrot.slane %v76_v14, %v92_v16 }
  0x44   :  { %647 = vmatpush1.bf16.msra.mxu0 %v876_v32  ;;  %688 = vmatpush1.bf16.msra.mxu1 %v879_v33 }
  0x45   :  { %648 = vmatprep.subr.bf16.mxu0 %v884_v34  ;;  %689 = vmatprep.subr.bf16.mxu1 %v887_v35 }
  0x48   :  { %649 = vmatpush1.bf16.msra.mxu0 %v882_v36  ;;  %690 = vmatpush1.bf16.msra.mxu1 %v885_v37 }
  0x49   :  { %650 = vmatprep.subr.bf16.mxu0 %v890_v38  ;;  %691 = vmatprep.subr.bf16.mxu1 %v893_v39 }
  0x4c   :  { %651 = vmatpush1.bf16.msra.mxu0 %v888_v40  ;;  %692 = vmatpush1.bf16.msra.mxu1 %v891_v41 }
  0x4d   :  { %652 = vmatprep.subr.bf16.mxu0 %v896_v42  ;;  %693 = vmatprep.subr.bf16.mxu1 %v899_v43 }
  0x50   :  { %653 = vmatpush2.bf16.msra.mxu0 %v894_v44  ;;  %694 = vmatpush2.bf16.msra.mxu1 %v897_v45  ;;  %v304_v45 = vld [vmem:[%s1092_s4] sm:$0x3] }
  0x51   :  { %654 = vmatprep.subr.bf16.mxu0 %v902_v46  ;;  %695 = vmatprep.subr.bf16.mxu1 %v905_v47  ;;  %v309_v46 = vrot.slane %v304_v45, %v1063_v12  ;;  %v313_v47 = vrot.slane %v304_v45, %v1068_v15 }
  0x54   :  { %655 = vmatpush2.bf16.msra.mxu0 %v900_v48  ;;  %696 = vmatpush2.bf16.msra.mxu1 %v903_v49 }
  0x55   :  { %656 = vmatprep.subr.bf16.mxu0 %v908_v50  ;;  %697 = vmatprep.subr.bf16.mxu1 %v911_v51 }
  0x58   :  { %657 = vmatpush2.bf16.msra.mxu0 %v906_v52  ;;  %698 = vmatpush2.bf16.msra.mxu1 %v909_v53 }
  0x59   :  { %658 = vmatprep.subr.bf16.mxu0 %v914_v54  ;;  %699 = vmatprep.subr.bf16.mxu1 %v917_v55  ;;  %v724_v55 = vld [vmem:[%s1093_s5] sm:$0x3] }
  0x5c   :  { %659 = vmatpush2.bf16.msra.mxu0 %v912_v56  ;;  %700 = vmatpush2.bf16.msra.mxu1 %v915_v57 }
  0x5d   :  { %660 = vmatprep.subr.bf16.mxu0 %v920_v58  ;;  %701 = vmatprep.subr.bf16.mxu1 %v923_v59 }
  0x60   :  { %661 = vmatpush2.bf16.msra.mxu0 %v918_v60  ;;  %702 = vmatpush2.bf16.msra.mxu1 %v921_v61  ;;  %v729_v61 = vrot.slane %v724_v55, %v1063_v12 }
  0x61   :  { %662 = vmatprep.subr.bf16.mxu0 %v926_v62  ;;  %703 = vmatprep.subr.bf16.mxu1 %v929_v63  ;;  %v733_v62 = vrot.slane %v724_v55, %v1068_v15 }
  0x64   :  { %663 = vmatpush2.bf16.msra.mxu0 %v924_v0  ;;  %704 = vmatpush2.bf16.msra.mxu1 %v927_v1 }
  0x65   :  { %664 = vmatprep.subr.bf16.mxu0 %v932_v2  ;;  %705 = vmatprep.subr.bf16.mxu1 %v935_v3 }
  0x68   :  { %665 = vmatpush2.bf16.msra.mxu0 %v930_v4  ;;  %706 = vmatpush2.bf16.msra.mxu1 %v933_v5 }
  0x69   :  { %666 = vmatprep.subr.bf16.mxu0 %v938_v7  ;;  %707 = vmatprep.subr.bf16.mxu1 %v941_v9 }
  0x6c   :  { %667 = vmatpush2.bf16.msra.mxu0 %v936_v6  ;;  %708 = vmatpush2.bf16.msra.mxu1 %v939_v8  ;;  %v742_v6 = vstv %s1094_s6 }
  0xef   :  { %v176_v19 = vpop.f32.mrf.mxu0  ;;  %v217_v20 = vpop.f32.mrf.mxu1 }
  0xf0   :  { %v177_v23 = vadd.f32 %v176_v19, %v81_v17  ;;  %v218_v24 = vadd.f32 %v217_v20, %v89_v18 }
  0xf1   :  { %v178_v25 = vpop.f32.mrf.mxu0  ;;  %v219_v26 = vpop.f32.mrf.mxu1 }
  0xf2   :  { %v228_v27 = vmul.f32 0.2, %v177_v23  ;;  %vm224_vm1 = vcmp.gt.f32.partialorder %v177_v23, 0.0  ;;  %v230_v28 = vmul.f32 0.2, %v218_v24  ;;  %v179_v29 = vadd.f32 %v178_v25, %v85_v21 }
  0xf3   :  { %v220_v30 = vadd.f32 %v219_v26, %v93_v22  ;;  %v180_v31 = vpop.f32.mrf.mxu0  ;;  %v221_v32 = vpop.f32.mrf.mxu1  ;;  %vm226_vm2 = vcmp.gt.f32.partialorder %v218_v24, 0.0 }
  0xf4   :  { %vm225_vm3 = vcmp.gt.f32.partialorder %v179_v29, 0.0  ;;  %v229_v33 = vmul.f32 0.2, %v179_v29  ;;  %v232_v36 = vsel %vm224_vm1, %v177_v23, %v228_v27  ;;  %v234_v38 = vsel %vm226_vm2, %v218_v24, %v230_v28 }
  0xf5   :  { %v181_v34 = vpop.f32.mrf.mxu0  ;;  %v222_v35 = vpop.f32.mrf.mxu1  ;;  %vm227_vm4 = vcmp.gt.f32.partialorder %v220_v30, 0.0  ;;  %v231_v37 = vmul.f32 0.2, %v220_v30  ;;  %v236_v42 = vpack.c.bf16 %v232_v36, %v232_v36  ;;  %v238_v44 = vpack.c.bf16 %v234_v38, %v234_v38 }
  0xf6   :  { %v233_v39 = vsel %vm225_vm3, %v179_v29, %v229_v33 }
  0xf7   :  { %v237_v40 = vpack.c.bf16 %v233_v39, %v233_v39  ;;  %v235_v41 = vsel %vm227_vm4, %v220_v30, %v231_v37 }
  0xf8   :  { %v239_v43 = vpack.c.bf16 %v235_v41, %v235_v41 }
  0xf9   :  { %668 = vmatprep.mubr.bf16.mxu0 %v237_v40 }
  0xfa   :  { %709 = vmatprep.mubr.bf16.mxu1 %v239_v43  ;;  %669 = vmatmul.mubr.bf16.vlgmr.msra.gmra.mxu0 %v236_v42 }
  0xfb   :  { %710 = vmatmul.mubr.bf16.vlgmr.msra.gmra.mxu1 %v238_v44 }
 0x1ba   :  { %v670_v48 = vpop.f32.mrf.mxu0 }
 0x1bb   :  { %v671_v49 = vadd.f32 %v670_v48, %v309_v46  ;;  %v711_v50 = vpop.f32.mrf.mxu1 }
 0x1bc   :  { %v672_v51 = vpop.f32.mrf.mxu0 }
 0x1bd   :  { %v712_v52 = vadd.f32 %v711_v50, %v671_v49  ;;  %v673_v53 = vadd.f32 %v672_v51, %v313_v47  ;;  %v713_v54 = vpop.f32.mrf.mxu1 }
 0x1be   :  { %v674_v56 = vpop.f32.mrf.mxu0 }
 0x1bf   :  { %vm718_vm5 = vcmp.gt.f32.partialorder %v712_v52, 0.0  ;;  %v720_v57 = vmul.f32 0.2, %v712_v52  ;;  %v714_v58 = vadd.f32 %v713_v54, %v673_v53  ;;  %v715_v59 = vpop.f32.mrf.mxu1 }
 0x1c0   :  { %v675_v60 = vpop.f32.mrf.mxu0 }
 0x1c1   :  { %vm719_vm6 = vcmp.gt.f32.partialorder %v714_v58, 0.0  ;;  %v721_v63 = vmul.f32 0.2, %v714_v58  ;;  %v716_v0 = vpop.f32.mrf.mxu1  ;;  %v722_v1 = vsel %vm718_vm5, %v712_v52, %v720_v57 }
 0x1c2   :  { %v736_v3 = vmul.f32 %v729_v61, %v722_v1 }
 0x1c3   :  { %v723_v2 = vsel %vm719_vm6, %v714_v58, %v721_v63 }
 0x1c4   :  { %v737_v4 = vmul.f32 %v733_v62, %v723_v2 }
 0x1c6   :  { %v738_v5 = vadd.f32 %v737_v4, %v736_v3 }
 0x1c8   :  { %739 = vadd.xlane.f32.xlu0 %v738_v5 }
 0x251   :  { %v740_v7 = vpop.xlane.xlu0 %739 }
 0x252   :  { %v743_v8 = vadd.f32 %v742_v6, %v740_v7 }
 0x254   :  { %745 = vst.msk [vmem:[%s1095_s7] sm:$0xff] %vm744_vm7, %v743_v8 }
 0x255   :  { %750 = vsyncpa [#allocation4], 1 }
 0x256   :  { %751 = vsyncpa [#allocation6], 1 }

</bundles_post_ra>
